<compile_context>
chip_gen: v7x
topology: tpu7x:2x2x1
jax: 0.10.0
libtpu: 0.0.40
codegen_flags: <defaults>
</compile_context>

<pallas_src>
import functools

import jax
import jax.numpy as jnp
from jax.experimental import pallas as pl
from jax.experimental.pallas import tpu as pltpu

DT = 0.01                       # module's self.dt
LANE = 128                      # TPU lane width
MAX_LANE_BLOCK = 2048           # lanes per grid step (multiple of 128)

# Fixed conv weights from Encoder_L96.__init__ (specialized at trace time).
CONV1_TAPS = (-1.0, 0.0, 0.0, 1.0, 0.0)   # offsets -2..+2 along N
CONV2_TAPS = (1.0, 0.0, 0.0)              # offsets -1..+1 along N


def _shift_plus(v, s, n):
    """out[i, :] = v[(i + s) % n, :] via XLU sublane rotation (no VMEM copies)."""
    s = s % n
    if s == 0:
        return v
    # pltpu.roll follows np.roll: roll(v, r)[i] = v[(i - r) % n]  =>  r = n - s.
    return pltpu.roll(v, shift=n - s, axis=0)


def _tap_sum(v, taps, center, n):
    """sum_t taps[t] * v[(i + t - center) % n]; zero taps skipped at trace time."""
    terms = [(float(w), t - center) for t, w in enumerate(taps) if float(w) != 0.0]
    if not terms:
        return jnp.zeros_like(v)
    # Put a +1-weight tap first so the fold needs no leading negate/multiply
    # (default conv1 becomes exactly: shift(+1) - shift(-2)).
    terms.sort(key=lambda tw: 0 if tw[0] == 1.0 else 1)
    w0, off0 = terms[0]
    acc = _shift_plus(v, off0, n)
    if w0 == -1.0:
        acc = -acc
    elif w0 != 1.0:
        acc = w0 * acc
    for w, off in terms[1:]:
        s = _shift_plus(v, off, n)
        if w == 1.0:
            acc = acc + s
        elif w == -1.0:
            acc = acc - s
        else:
            acc = acc + w * s
    return acc


def _l96_rk4_kernel(f_ref, x_ref, o_ref, *, n, w1, w2):
    """f_ref: SMEM f32[1] (learnable F);  x_ref/o_ref: VMEM f32[N, BLK]."""
    x = x_ref[...]                      # (N, BLK): N on sublanes, batch*time on lanes
    F = f_ref[0]

    def ode(v):
        x1 = _tap_sum(v, w1, 2, n)      # default: v[(i+1)%N] - v[(i-2)%N]
        x2 = _tap_sum(v, w2, 1, n)      # default: v[(i-1)%N]
        return x1 * x2 - v + F

    k1 = ode(x)
    k2 = ode(x + (0.5 * DT) * k1)
    k3 = ode(x + (0.5 * DT) * k2)
    k4 = ode(x + DT * k3)
    # Lane-dense store: kernel emits only xpred; the cat with x[..., 0:1]
    # happens in the wrapper so the stored last dim stays a 128-multiple.
    o_ref[...] = x + DT * (k1 + 2.0 * k2 + 2.0 * k3 + k4) / 6.0


def encoder_l96_forward(x_nchw, f_param, w1=CONV1_TAPS, w2=CONV2_TAPS):
    """x_nchw: (B, 1, N, W) float32 -> (B, 1, N, W+1) float32."""
    B, C, N, W = x_nchw.shape
    assert C == 1
    L = B * W

    # Repack to (N, B*W): shift axis N on sublanes, wide lane axis over batch*time.
    x = jnp.transpose(x_nchw.reshape(B, N, W), (1, 0, 2)).reshape(N, L)

    # Pad the lane axis to a multiple of 128 (unmasked vst), pick lane-chunk block.
    l_pad = -(-L // LANE) * LANE
    if l_pad <= MAX_LANE_BLOCK:
        blk = l_pad
    else:
        blk = MAX_LANE_BLOCK
        l_pad = -(-l_pad // blk) * blk
    if l_pad != L:
        x = jnp.pad(x, ((0, 0), (0, l_pad - L)))

    kernel = functools.partial(
        _l96_rk4_kernel, n=N,
        w1=tuple(float(t) for t in w1), w2=tuple(float(t) for t in w2))

    xpred = pl.pallas_call(
        kernel,
        out_shape=jax.ShapeDtypeStruct((N, l_pad), x.dtype),
        grid=(l_pad // blk,),
        in_specs=[
            pl.BlockSpec(memory_space=pltpu.MemorySpace.SMEM),   # F (scalar param)
            pl.BlockSpec((N, blk), lambda j: (0, j)),            # x lane-chunk
        ],
        out_specs=pl.BlockSpec((N, blk), lambda j: (0, j)),
        compiler_params=pltpu.CompilerParams(
            dimension_semantics=("parallel",)),                  # chunks split across TCs
    )(f_param, x)

    # Un-pack and do the cheap concat in XLA (output last dim W+1 handled here).
    xpred = xpred[:, :L].reshape(N, B, W).transpose(1, 0, 2).reshape(B, 1, N, W)
    return jnp.concatenate([x_nchw[:, :, :, 0:1], xpred], axis=3)


def _reference_forward(x, F):
    """Pure-JAX reference mirroring the PyTorch module (for verification)."""
    def ode(v):
        xp1 = jnp.roll(v, -1, axis=2)   # x[(i+1)%N]
        xm2 = jnp.roll(v, 2, axis=2)    # x[(i-2)%N]
        xm1 = jnp.roll(v, 1, axis=2)    # x[(i-1)%N]
        return (xp1 - xm2) * xm1 - v + F
    k1 = ode(x)
    k2 = ode(x + 0.5 * DT * k1)
    k3 = ode(x + 0.5 * DT * k2)
    k4 = ode(x + DT * k3)
    xpred = x + DT * (k1 + 2.0 * k2 + 2.0 * k3 + k4) / 6.0
    return jnp.concatenate([x[:, :, :, 0:1], xpred], axis=3)


if __name__ == "__main__":
    # Deterministic parameters (exactly as in Encoder_L96.__init__)
    f_param = jnp.array([8.0], dtype=jnp.float32)   # self.F (runtime parameter)

    # Small deterministic input: (B=2, C=1, N=16, W=8) NCHW
    key = jax.random.PRNGKey(0)
    x = jax.random.normal(key, (2, 1, 16, 8), dtype=jnp.float32)

    out = encoder_l96_forward(x, f_param)
    out = jax.block_until_ready(out)

    ref = _reference_forward(x, f_param[0])
    assert out.shape == (2, 1, 16, 9), out.shape
    assert jnp.allclose(out, ref, atol=1e-5, rtol=1e-5), "mismatch vs reference"

    print("KERNEL_OK")
</pallas_src>

<mosaic_0001>
module attributes {stable_mosaic.version = 11 : i64} {
  func.func @_l96_rk4_kernel(%arg0: i32, %arg1: memref<1xf32, #tpu.memory_space<smem>>, %arg2: memref<16x128xf32, #tpu.memory_space<vmem>>, %arg3: memref<16x128xf32, #tpu.memory_space<vmem>>) attributes {dimension_semantics = [#tpu.dimension_semantics<parallel>], iteration_bounds = array<i64: 1>, scalar_prefetch = 0 : i64, scratch_operands = 0 : i64, tpu.core_type = #tpu.core_type<tc>, window_params = [{transform_indices = @transform_0, window_bounds = array<i64: 1>}, {transform_indices = @transform_1, window_bounds = array<i64: 16, 128>}, {transform_indices = @transform_2, window_bounds = array<i64: 16, 128>}]} {
    %c0 = arith.constant 0 : index
    %c0_0 = arith.constant 0 : index
    %0 = vector.load %arg2[%c0, %c0_0] : memref<16x128xf32, #tpu.memory_space<vmem>>, vector<16x128xf32>
    %c0_1 = arith.constant 0 : index
    %1 = memref.load %arg1[%c0_1] : memref<1xf32, #tpu.memory_space<smem>>
    %c15_i32 = arith.constant 15 : i32
    %2 = tpu.dynamic_rotate %0 by %c15_i32 dim 0 : vector<16x128xf32>, i32 -> vector<16x128xf32>
    %c2_i32 = arith.constant 2 : i32
    %3 = tpu.dynamic_rotate %0 by %c2_i32 dim 0 : vector<16x128xf32>, i32 -> vector<16x128xf32>
    %4 = arith.subf %2, %3 : vector<16x128xf32>
    %c1_i32 = arith.constant 1 : i32
    %5 = tpu.dynamic_rotate %0 by %c1_i32 dim 0 : vector<16x128xf32>, i32 -> vector<16x128xf32>
    %6 = arith.mulf %4, %5 : vector<16x128xf32>
    %7 = arith.subf %6, %0 : vector<16x128xf32>
    %8 = vector.broadcast %1 : f32 to vector<16x128xf32>
    %9 = arith.addf %7, %8 : vector<16x128xf32>
    %cst = arith.constant 5.000000e-03 : f32
    %10 = vector.broadcast %cst : f32 to vector<16x128xf32>
    %11 = arith.mulf %10, %9 : vector<16x128xf32>
    %12 = arith.addf %0, %11 : vector<16x128xf32>
    %c15_i32_2 = arith.constant 15 : i32
    %13 = tpu.dynamic_rotate %12 by %c15_i32_2 dim 0 : vector<16x128xf32>, i32 -> vector<16x128xf32>
    %c2_i32_3 = arith.constant 2 : i32
    %14 = tpu.dynamic_rotate %12 by %c2_i32_3 dim 0 : vector<16x128xf32>, i32 -> vector<16x128xf32>
    %15 = arith.subf %13, %14 : vector<16x128xf32>
    %c1_i32_4 = arith.constant 1 : i32
    %16 = tpu.dynamic_rotate %12 by %c1_i32_4 dim 0 : vector<16x128xf32>, i32 -> vector<16x128xf32>
    %17 = arith.mulf %15, %16 : vector<16x128xf32>
    %18 = arith.subf %17, %12 : vector<16x128xf32>
    %19 = vector.broadcast %1 : f32 to vector<16x128xf32>
    %20 = arith.addf %18, %19 : vector<16x128xf32>
    %cst_5 = arith.constant 5.000000e-03 : f32
    %21 = vector.broadcast %cst_5 : f32 to vector<16x128xf32>
    %22 = arith.mulf %21, %20 : vector<16x128xf32>
    %23 = arith.addf %0, %22 : vector<16x128xf32>
    %c15_i32_6 = arith.constant 15 : i32
    %24 = tpu.dynamic_rotate %23 by %c15_i32_6 dim 0 : vector<16x128xf32>, i32 -> vector<16x128xf32>
    %c2_i32_7 = arith.constant 2 : i32
    %25 = tpu.dynamic_rotate %23 by %c2_i32_7 dim 0 : vector<16x128xf32>, i32 -> vector<16x128xf32>
    %26 = arith.subf %24, %25 : vector<16x128xf32>
    %c1_i32_8 = arith.constant 1 : i32
    %27 = tpu.dynamic_rotate %23 by %c1_i32_8 dim 0 : vector<16x128xf32>, i32 -> vector<16x128xf32>
    %28 = arith.mulf %26, %27 : vector<16x128xf32>
    %29 = arith.subf %28, %23 : vector<16x128xf32>
    %30 = vector.broadcast %1 : f32 to vector<16x128xf32>
    %31 = arith.addf %29, %30 : vector<16x128xf32>
    %cst_9 = arith.constant 0.00999999977 : f32
    %32 = vector.broadcast %cst_9 : f32 to vector<16x128xf32>
    %33 = arith.mulf %32, %31 : vector<16x128xf32>
    %34 = arith.addf %0, %33 : vector<16x128xf32>
    %c15_i32_10 = arith.constant 15 : i32
    %35 = tpu.dynamic_rotate %34 by %c15_i32_10 dim 0 : vector<16x128xf32>, i32 -> vector<16x128xf32>
    %c2_i32_11 = arith.constant 2 : i32
    %36 = tpu.dynamic_rotate %34 by %c2_i32_11 dim 0 : vector<16x128xf32>, i32 -> vector<16x128xf32>
    %37 = arith.subf %35, %36 : vector<16x128xf32>
    %c1_i32_12 = arith.constant 1 : i32
    %38 = tpu.dynamic_rotate %34 by %c1_i32_12 dim 0 : vector<16x128xf32>, i32 -> vector<16x128xf32>
    %39 = arith.mulf %37, %38 : vector<16x128xf32>
    %40 = arith.subf %39, %34 : vector<16x128xf32>
    %41 = vector.broadcast %1 : f32 to vector<16x128xf32>
    %42 = arith.addf %40, %41 : vector<16x128xf32>
    %cst_13 = arith.constant 2.000000e+00 : f32
    %43 = vector.broadcast %cst_13 : f32 to vector<16x128xf32>
    %44 = arith.mulf %43, %20 : vector<16x128xf32>
    %45 = arith.addf %9, %44 : vector<16x128xf32>
    %cst_14 = arith.constant 2.000000e+00 : f32
    %46 = vector.broadcast %cst_14 : f32 to vector<16x128xf32>
    %47 = arith.mulf %46, %31 : vector<16x128xf32>
    %48 = arith.addf %45, %47 : vector<16x128xf32>
    %49 = arith.addf %48, %42 : vector<16x128xf32>
    %cst_15 = arith.constant 0.00999999977 : f32
    %50 = vector.broadcast %cst_15 : f32 to vector<16x128xf32>
    %51 = arith.mulf %50, %49 : vector<16x128xf32>
    %cst_16 = arith.constant 6.000000e+00 : f32
    %52 = vector.broadcast %cst_16 : f32 to vector<16x128xf32>
    %53 = arith.divf %51, %52 : vector<16x128xf32>
    %54 = arith.addf %0, %53 : vector<16x128xf32>
    %c0_17 = arith.constant 0 : index
    %c0_18 = arith.constant 0 : index
    %55 = vector.load %arg3[%c0_17, %c0_18] : memref<16x128xf32, #tpu.memory_space<vmem>>, vector<16x128xf32>
    tpu.vector_store %arg3[%c0_17, %c0_18], %54 {strides = array<i32>} : memref<16x128xf32, #tpu.memory_space<vmem>>, vector<16x128xf32>,
    return
  }
  func.func @transform_0(%arg0: i32) -> i32 {
    %c0_i32 = arith.constant 0 : i32
    %c0_i32_0 = arith.constant 0 : i32
    return %c0_i32 : i32
  }
  func.func @transform_1(%arg0: i32) -> (i32, i32) {
    %c0_i32 = arith.constant 0 : i32
    %c0_i32_0 = arith.constant 0 : i32
    return %c0_i32, %arg0 : i32, i32
  }
  func.func @transform_2(%arg0: i32) -> (i32, i32) {
    %c0_i32 = arith.constant 0 : i32
    %c0_i32_0 = arith.constant 0 : i32
    return %c0_i32, %arg0 : i32, i32
  }
}

</mosaic_0001>

<bundles_post_ra>
// kernel: tpu_custom_call.1
= control target key start
LH: loop header
LB: loop body
LE: loop exit
PB: predicated region body
PF: predicated region fallthrough
CT: control target
= control target key end

     0   :  { %8 = vsyncpa [#allocation4], 0  ;;  %s351_s0 = inlined_call_operand.<no memory space> [shape: f32[1], index: 0, kind: input, shape index: {}]   ;;  %s352_s1 = inlined_call_operand.hbm [shape: f32[16,128], index: 1, kind: input, shape index: {}]   ;;  %s353_s2 = inlined_call_operand.hbm [shape: f32[16,128], index: 2, kind: output, shape index: {}]  }
   0x1   :  { %9 = vsyncpa [#allocation5], 0  ;;  %s216_s9 = smov [#allocation3]   ;;  %s168_s13 = scalar_lea.hbm %s352_s1, 256 }
   0x2   :  { %s17_s10 = sshll.u32 %s216_s9, 4  ;;  %p169_p0 = scmp.ne.s32.totalorder %s352_s1, %s168_s13  ;;  %s18_s10 = int_to_ptr.vmem [resolvable:$true] %s17_s10 }
   0x3   :  { %p172_p1 = scmp.lt.u32.totalorder %s168_s13, %s352_s1 }
   0x5   :  { %p174_p2 = pnand %p172_p1, %p169_p0 }
   0x7   :  { %177 = shalt.err (!%p174_p2)
}
   0x8   :  { %s178_s18 = scalar_lea.vmem %s18_s10, 256  ;;  %p183_p4 = scmp.lt.s32.totalorder %s18_s10, %s18_s10 }
   0x9   :  { %p179_p3 = scmp.ne.s32.totalorder %s18_s10, %s178_s18  ;;  %p184_p5 = scmp.lt.s32.totalorder %s178_s18, %s178_s18 }
   0xb   :  { %p185_p6 = por %p184_p5, %p183_p4 }
   0xd   :  { %p186_p7 = pnand %p185_p6, %p179_p3 }
   0xf   :  { %189 = shalt.err (!%p186_p7)
}
  0x10   :  { %s217_s19 = smov 128   ;;  %s218_s20 = smov 8  }
  0x11   :  { %23 = dma.hbm_to_vmem [thread:$0]  %s352_s1, 256, %s18_s10, [#allocation4], %s217_s19, %s217_s19, %s218_s20  }
  0x12   :  { %212 = dma.done.wait [#allocation4], 256  }
  0x13   :  { %213 = vsyncadd [#allocation4], 4294967040  ;;  %v32_v0 = vlaneseq  ;;  %v252_v2 = vld [vmem:[#allocation3] sm:$0xff]  ;;  %v254_v3 = vld [vmem:[#allocation3 + $0x8] sm:$0xff]  ;;  %v280_v20 = vstv %s351_s0  ;;  %s219_s0 = smov [#allocation6]  }
  0x14   :  { %v30_v4 = vrot.slane %v252_v2, 1  ;;  %v31_v5 = vrot.slane %v254_v3, 1  ;;  %v37_v6 = vrot.slane %v252_v2, 6  ;;  %v38_v7 = vrot.slane %v254_v3, 6  ;;  %s152_s24 = sshll.u32 %s219_s0, 4  ;;  %s153_s24 = int_to_ptr.vmem [resolvable:$true] %s152_s24 }
  0x15   :  { %v250_v1 = vshrl.u32 %v32_v0, 7  ;;  %v44_v8 = vrot.slane %v252_v2, 7  ;;  %v45_v9 = vrot.slane %v254_v3, 7  ;;  %s190_s25 = scalar_lea.vmem %s153_s24, 256  ;;  %p195_p9 = scmp.lt.s32.totalorder %s153_s24, %s153_s24 }
  0x16   :  { %p191_p8 = scmp.ne.s32.totalorder %s153_s24, %s190_s25  ;;  %p196_p10 = scmp.lt.s32.totalorder %s190_s25, %s190_s25 }
  0x17   :  { %vm34_vm0 = vcmp.lt.s32.totalorder %v250_v1, 7  ;;  %vm39_vm1 = vcmp.lt.s32.totalorder %v250_v1, 2  ;;  %vm46_vm2 = vcmp.lt.s32.totalorder %v250_v1, 1 }
  0x18   :  { %v35_v10 = vsel %vm34_vm0, %v30_v4, %v31_v5  ;;  %v36_v11 = vsel %vm34_vm0, %v31_v5, %v30_v4  ;;  %v40_v12 = vsel %vm39_vm1, %v37_v6, %v38_v7  ;;  %v41_v13 = vsel %vm39_vm1, %v38_v7, %v37_v6  ;;  %p197_p11 = por %p196_p10, %p195_p9 }
  0x19   :  { %v42_v14 = vsub.f32 %v35_v10, %v41_v13  ;;  %v43_v15 = vsub.f32 %v36_v11, %v40_v12  ;;  %v47_v16 = vsel %vm46_vm2, %v44_v8, %v45_v9  ;;  %v48_v17 = vsel %vm46_vm2, %v45_v9, %v44_v8 }
  0x1a   :  { %p198_p12 = pnand %p197_p11, %p191_p8 }
  0x1b   :  { %v49_v18 = vmul.f32 %v48_v17, %v42_v14  ;;  %v50_v19 = vmul.f32 %v47_v16, %v43_v15 }
  0x1d   :  { %v51_v21 = vsub.f32 %v49_v18, %v252_v2  ;;  %v52_v22 = vsub.f32 %v50_v19, %v254_v3 }
  0x1f   :  { %v54_v23 = vadd.f32 %v280_v20, %v51_v21  ;;  %v55_v24 = vadd.f32 %v280_v20, %v52_v22 }
  0x21   :  { %v56_v25 = vmul.f32 0.005, %v54_v23  ;;  %v57_v26 = vmul.f32 0.005, %v55_v24 }
  0x23   :  { %v58_v27 = vadd.f32 %v56_v25, %v252_v2  ;;  %v59_v28 = vadd.f32 %v57_v26, %v254_v3 }
  0x25   :  { %v60_v29 = vrot.slane %v58_v27, 1  ;;  %v61_v30 = vrot.slane %v59_v28, 1  ;;  %v64_v31 = vrot.slane %v58_v27, 6  ;;  %v65_v32 = vrot.slane %v59_v28, 6 }
  0x26   :  { %v70_v33 = vrot.slane %v58_v27, 7  ;;  %v71_v34 = vrot.slane %v59_v28, 7 }
  0x27   :  { %v62_v35 = vsel %vm34_vm0, %v60_v29, %v61_v30  ;;  %v63_v36 = vsel %vm34_vm0, %v61_v30, %v60_v29  ;;  %v66_v37 = vsel %vm39_vm1, %v64_v31, %v65_v32  ;;  %v67_v38 = vsel %vm39_vm1, %v65_v32, %v64_v31 }
  0x28   :  { %v68_v39 = vsub.f32 %v62_v35, %v67_v38  ;;  %v69_v40 = vsub.f32 %v63_v36, %v66_v37  ;;  %v72_v41 = vsel %vm46_vm2, %v70_v33, %v71_v34  ;;  %v73_v42 = vsel %vm46_vm2, %v71_v34, %v70_v33 }
  0x2a   :  { %v74_v43 = vmul.f32 %v73_v42, %v68_v39  ;;  %v75_v44 = vmul.f32 %v72_v41, %v69_v40 }
  0x2c   :  { %v76_v45 = vsub.f32 %v74_v43, %v58_v27  ;;  %v77_v46 = vsub.f32 %v75_v44, %v59_v28 }
  0x2e   :  { %v78_v47 = vadd.f32 %v76_v45, %v280_v20  ;;  %v79_v48 = vadd.f32 %v77_v46, %v280_v20 }
  0x30   :  { %v80_v49 = vmul.f32 0.005, %v78_v47  ;;  %v81_v50 = vmul.f32 0.005, %v79_v48  ;;  %v128_v12 = vmul.f32 2.0, %v78_v47  ;;  %v129_v13 = vmul.f32 2.0, %v79_v48 }
  0x32   :  { %v82_v51 = vadd.f32 %v80_v49, %v252_v2  ;;  %v83_v52 = vadd.f32 %v81_v50, %v254_v3  ;;  %v130_v18 = vadd.f32 %v128_v12, %v54_v23  ;;  %v131_v19 = vadd.f32 %v129_v13, %v55_v24 }
  0x34   :  { %v84_v53 = vrot.slane %v82_v51, 1  ;;  %v85_v54 = vrot.slane %v83_v52, 1  ;;  %v88_v55 = vrot.slane %v82_v51, 6  ;;  %v89_v56 = vrot.slane %v83_v52, 6 }
  0x35   :  { %v94_v57 = vrot.slane %v82_v51, 7  ;;  %v95_v58 = vrot.slane %v83_v52, 7 }
  0x36   :  { %v86_v59 = vsel %vm34_vm0, %v84_v53, %v85_v54  ;;  %v87_v60 = vsel %vm34_vm0, %v85_v54, %v84_v53  ;;  %v90_v61 = vsel %vm39_vm1, %v88_v55, %v89_v56  ;;  %v91_v62 = vsel %vm39_vm1, %v89_v56, %v88_v55 }
  0x37   :  { %v92_v63 = vsub.f32 %v86_v59, %v91_v62  ;;  %v93_v0 = vsub.f32 %v87_v60, %v90_v61  ;;  %v96_v4 = vsel %vm46_vm2, %v94_v57, %v95_v58  ;;  %v97_v5 = vsel %vm46_vm2, %v95_v58, %v94_v57 }
  0x39   :  { %v98_v6 = vmul.f32 %v97_v5, %v92_v63  ;;  %v99_v7 = vmul.f32 %v96_v4, %v93_v0 }
  0x3b   :  { %v100_v8 = vsub.f32 %v98_v6, %v82_v51  ;;  %v101_v9 = vsub.f32 %v99_v7, %v83_v52 }
  0x3d   :  { %v102_v10 = vadd.f32 %v100_v8, %v280_v20  ;;  %v103_v11 = vadd.f32 %v101_v9, %v280_v20 }
  0x3f   :  { %v104_v14 = vmul.f32 0.01, %v102_v10  ;;  %v105_v15 = vmul.f32 0.01, %v103_v11  ;;  %v132_v29 = vmul.f32 2.0, %v102_v10  ;;  %v133_v30 = vmul.f32 2.0, %v103_v11 }
  0x41   :  { %v106_v16 = vadd.f32 %v104_v14, %v252_v2  ;;  %v107_v17 = vadd.f32 %v105_v15, %v254_v3  ;;  %v134_v40 = vadd.f32 %v132_v29, %v130_v18  ;;  %v135_v42 = vadd.f32 %v133_v30, %v131_v19 }
  0x43   :  { %v108_v21 = vrot.slane %v106_v16, 1  ;;  %v109_v22 = vrot.slane %v107_v17, 1  ;;  %v112_v25 = vrot.slane %v106_v16, 6  ;;  %v113_v26 = vrot.slane %v107_v17, 6 }
  0x44   :  { %v118_v27 = vrot.slane %v106_v16, 7  ;;  %v119_v28 = vrot.slane %v107_v17, 7 }
  0x45   :  { %v110_v31 = vsel %vm34_vm0, %v108_v21, %v109_v22  ;;  %v115_v32 = vsel %vm39_vm1, %v113_v26, %v112_v25  ;;  %v111_v33 = vsel %vm34_vm0, %v109_v22, %v108_v21  ;;  %v114_v23 = vsel %vm39_vm1, %v112_v25, %v113_v26 }
  0x46   :  { %v116_v24 = vsub.f32 %v110_v31, %v115_v32  ;;  %v121_v34 = vsel %vm46_vm2, %v119_v28, %v118_v27  ;;  %v117_v35 = vsub.f32 %v111_v33, %v114_v23  ;;  %v120_v36 = vsel %vm46_vm2, %v118_v27, %v119_v28 }
  0x48   :  { %v122_v37 = vmul.f32 %v121_v34, %v116_v24  ;;  %v123_v38 = vmul.f32 %v120_v36, %v117_v35 }
  0x4a   :  { %v124_v39 = vsub.f32 %v122_v37, %v106_v16  ;;  %v125_v41 = vsub.f32 %v123_v38, %v107_v17 }
  0x4c   :  { %v126_v43 = vadd.f32 %v124_v39, %v280_v20  ;;  %v127_v44 = vadd.f32 %v125_v41, %v280_v20 }
  0x4e   :  { %v136_v45 = vadd.f32 %v134_v40, %v126_v43  ;;  %v137_v46 = vadd.f32 %v135_v42, %v127_v44 }
  0x50   :  { %v138_v47 = vmul.f32 0.01, %v136_v45  ;;  %v139_v48 = vmul.f32 0.01, %v137_v46 }
  0x52   :  { %v141_v49 = vmul.f32 0.16666667, %v138_v47  ;;  %v142_v50 = vmul.f32 0.16666667, %v139_v48 }
  0x54   :  { %v143_v1 = vadd.f32 %v141_v49, %v252_v2  ;;  %v144_v51 = vadd.f32 %v142_v50, %v254_v3 }
  0x56   :  { %145 = vst [vmem:[#allocation6] sm:$0xff] %v143_v1  ;;  %146 = vst [vmem:[#allocation6 + $0x8] sm:$0xff] %v144_v51 }
  0x57   :  { %201 = shalt.err (!%p198_p12)
}
  0x58   :  { %s202_s28 = scalar_lea.hbm %s353_s2, 256 }
  0x59   :  { %p203_p13 = scmp.ne.s32.totalorder %s353_s2, %s202_s28  ;;  %p206_p0 = scmp.lt.u32.totalorder %s202_s28, %s353_s2 }
  0x5b   :  { %p208_p1 = pnand %p206_p0, %p203_p13 }
  0x5d   :  { %211 = shalt.err (!%p208_p1)
}
  0x5e   :  { %158 = dma.vmem_to_hbm [thread:$0]  %s153_s24, 256, %s353_s2, [#allocation5], %s217_s19, %s217_s19, %s218_s20  }
  0x5f   :  { %214 = dma.done.wait [#allocation5], 256  }
  0x60   :  { %215 = vsyncadd [#allocation5], 4294967040 }
  0x61   :  { %162 = vsyncpa [#allocation4], 1 }
  0x62   :  { %163 = vsyncpa [#allocation5], 1 }

</bundles_post_ra>
